<compile_context>
chip_gen: v7x
topology: tpu7x:2x2x1
jax: 0.10.0
libtpu: 0.0.40
codegen_flags: <defaults>
</compile_context>

<pallas_src>
import functools

import jax
import jax.numpy as jnp
from jax.experimental import pallas as pl
from jax.experimental.pallas import tpu as pltpu


def _round_up(x, m):
    return ((x + m - 1) // m) * m


def _bvq_kernel(*refs, use_tanh: bool, deterministic: bool,
                tile_cols: int, total_cols: int, loss_dtype):
    if deterministic:
        h_ref, w_ref, b_ref, embT_ref, zq_ref, zb_ref, lp_ref = refs
        u_ref = None
    else:
        h_ref, w_ref, b_ref, embT_ref, u_ref, zq_ref, zb_ref, lp_ref = refs

    i = pl.program_id(1)  # column-tile index along W

    # --- Conv1d(kernel_size=1) == channel matmul: (N, C) @ (C, TW) -> (N, TW)
    pre = jnp.dot(w_ref[...], h_ref[...],
                  preferred_element_type=jnp.float32) + b_ref[...]

    # Mask for a (possibly) ragged last W tile.
    col = i * tile_cols + jax.lax.broadcasted_iota(jnp.int32, pre.shape, 1)
    valid = col < total_cols

    # --- activation (needed only for the loss term / bernoulli probability).
    #     loss_dtype=bfloat16 halves EUP cost on v6e/v7x; keep f32 on v5e.
    pre_act = pre.astype(loss_dtype)
    z = jnp.tanh(pre_act) if use_tanh else jax.nn.sigmoid(pre_act)

    # --- code_book_loss partial: sum(sigmoid(z) * (1 - sigmoid(z))) over valid
    #     columns.  (Double sigmoid is intentional: faithful to the PyTorch
    #     module, which applies sigmoid to the already-activated z.)
    s = jax.nn.sigmoid(z)
    sq = (s * (1.0 - s)).astype(jnp.float32)
    partial = jnp.sum(jnp.where(valid, sq, 0.0))
    lp_ref[...] = jnp.full(lp_ref.shape, partial, dtype=jnp.float32)

    # --- binary quantization, fused into one select.
    neg = -1.0 if use_tanh else 0.0
    if deterministic:
        # sigmoid(pre) > 0.5 <=> pre > 0 ; tanh(pre)*0.5+0.5 > 0.5 <=> pre > 0
        z_b = jnp.where(pre > 0.0, 1.0, neg)
    else:
        p = (z * 0.5 + 0.5) if use_tanh else z
        z_b = jnp.where(u_ref[...] < p.astype(jnp.float32), 1.0, neg)

    zb_ref[...] = z_b.astype(zb_ref.dtype)

    # --- z_q = embed.weight^T @ z_b : (D, N) @ (N, TW) -> (D, TW)
    zq_ref[...] = jnp.dot(embT_ref[...], z_b,
                          preferred_element_type=jnp.float32).astype(zq_ref.dtype)


def binary_vector_quantizer_forward(h, proj_w, proj_b, embed_w, *,
                                    use_tanh=False, deterministic=True,
                                    seed=0, tile_cols=4096,
                                    zb_dtype=jnp.bfloat16,
                                    zq_dtype=jnp.float32,
                                    loss_compute_dtype=jnp.float32):
    """h: (B, C, W); proj_w: (N, C); proj_b: (N,); embed_w: (N, D)."""
    B, C, W = h.shape
    N, D = embed_w.shape
    assert proj_w.shape == (N, C)
    assert proj_b.shape == (N,)

    # Lane-dense tile width along W: multiple of 128, capped at tile_cols.
    TW = min(_round_up(int(tile_cols), 128), _round_up(W, 128))
    nw = pl.cdiv(W, TW)

    b2 = proj_b.reshape(N, 1)
    embT = jnp.transpose(embed_w)           # (D, N): tiny one-time transpose

    kernel = functools.partial(
        _bvq_kernel, use_tanh=use_tanh, deterministic=deterministic,
        tile_cols=TW, total_cols=W, loss_dtype=loss_compute_dtype)

    in_specs = [
        pl.BlockSpec((None, C, TW), lambda b, i: (b, 0, i)),  # h tile (native)
        pl.BlockSpec((N, C), lambda b, i: (0, 0)),            # conv weight
        pl.BlockSpec((N, 1), lambda b, i: (0, 0)),            # conv bias
        pl.BlockSpec((D, N), lambda b, i: (0, 0)),            # embed.weight^T
    ]
    args = [h, proj_w, b2, embT]
    if not deterministic:
        # TODO(synk): replace with in-kernel pltpu.prng_* on real TPU HW to
        # drop this HBM noise stream (no interpret/CPU lowering for it).
        noise = jax.random.uniform(jax.random.PRNGKey(seed), (B, N, W),
                                   dtype=jnp.float32)
        in_specs.append(pl.BlockSpec((None, N, TW), lambda b, i: (b, 0, i)))
        args.append(noise)

    out_shape = (
        jax.ShapeDtypeStruct((B, D, W), zq_dtype),           # z_q (native)
        jax.ShapeDtypeStruct((B, N, W), zb_dtype),           # z_b (native)
        jax.ShapeDtypeStruct((B, nw, 8, 128), jnp.float32),  # loss partials
    )
    out_specs = (
        pl.BlockSpec((None, D, TW), lambda b, i: (b, 0, i)),
        pl.BlockSpec((None, N, TW), lambda b, i: (b, 0, i)),
        pl.BlockSpec((None, None, 8, 128), lambda b, i: (b, i, 0, 0)),
    )

    z_q, z_b, lparts = pl.pallas_call(
        kernel,
        out_shape=out_shape,
        grid=(B, nw),
        in_specs=in_specs,
        out_specs=out_specs,
        compiler_params=pltpu.CompilerParams(
            dimension_semantics=("parallel", "parallel"),  # no cross-step state
            vmem_limit_bytes=32 * 1024 * 1024,             # safe on v7x (64 MiB)
        ),
    )(*args)

    # Finish the loss mean in the wrapper (per-block partial sums).
    loss = jnp.sum(lparts[:, :, 0, 0]) / float(B * N * W)
    return z_q, loss, {'binary_code': z_b}, z_b


def _reference_forward(h, proj_w, proj_b, embed_w, use_tanh=False,
                       deterministic=True, noise=None):
    """Pure-JAX reference mirroring the PyTorch forward."""
    pre = jnp.einsum('nc,bcw->bnw', proj_w, h) + proj_b[None, :, None]
    z = jnp.tanh(pre) if use_tanh else jax.nn.sigmoid(pre)
    s = jax.nn.sigmoid(z)
    loss = jnp.mean(s * (1.0 - s))
    x = z * 0.5 + 0.5 if use_tanh else z
    if deterministic:
        bit = (x > 0.5).astype(jnp.float32)
    else:
        bit = (noise < x).astype(jnp.float32)
    z_b = (bit - 0.5) * 2.0 if use_tanh else bit
    z_q = jnp.einsum('bnw,nd->bdw', z_b, embed_w)
    return z_q, loss, z_b


if __name__ == "__main__":
    # Small shapes consistent with the module's Conv1d / Embedding.
    B, num_hiddens, W = 2, 32, 128
    codebook_size, emb_dim = 64, 16

    key = jax.random.PRNGKey(0)
    k_h, k_w, k_b, k_e = jax.random.split(key, 4)

    h = jax.random.normal(k_h, (B, num_hiddens, W), dtype=jnp.float32)
    proj_w = jax.random.normal(k_w, (codebook_size, num_hiddens),
                               dtype=jnp.float32) * 0.2
    proj_b = jax.random.normal(k_b, (codebook_size,), dtype=jnp.float32) * 0.1
    embed_w = jax.random.normal(k_e, (codebook_size, emb_dim),
                                dtype=jnp.float32)

    # --- deterministic, sigmoid activation ---------------------------------
    z_q, loss, aux, z_b = binary_vector_quantizer_forward(
        h, proj_w, proj_b, embed_w, use_tanh=False, deterministic=True)
    jax.block_until_ready((z_q, loss, z_b))
    z_q_ref, loss_ref, z_b_ref = _reference_forward(
        h, proj_w, proj_b, embed_w, use_tanh=False, deterministic=True)
    assert z_q.shape == (B, emb_dim, W)
    assert z_b.shape == (B, codebook_size, W)
    assert jnp.allclose(z_b.astype(jnp.float32), z_b_ref)
    assert jnp.allclose(z_q, z_q_ref, atol=1e-4, rtol=1e-4)
    assert jnp.allclose(loss, loss_ref, atol=1e-5, rtol=1e-5)

    # --- deterministic, tanh activation -------------------------------------
    z_q_t, loss_t, _, z_b_t = binary_vector_quantizer_forward(
        h, proj_w, proj_b, embed_w, use_tanh=True, deterministic=True)
    jax.block_until_ready((z_q_t, loss_t, z_b_t))
    z_q_tr, loss_tr, z_b_tr = _reference_forward(
        h, proj_w, proj_b, embed_w, use_tanh=True, deterministic=True)
    assert jnp.allclose(z_b_t.astype(jnp.float32), z_b_tr)
    assert jnp.allclose(z_q_t, z_q_tr, atol=1e-4, rtol=1e-4)
    assert jnp.allclose(loss_t, loss_tr, atol=1e-5, rtol=1e-5)

    # --- bf16 loss-transcendental path (v6e / v7x EUP optimization) ---------
    _, loss_bf16, _, _ = binary_vector_quantizer_forward(
        h, proj_w, proj_b, embed_w, use_tanh=False, deterministic=True,
        loss_compute_dtype=jnp.bfloat16)
    jax.block_until_ready(loss_bf16)
    assert abs(float(loss_bf16) - float(loss_ref)) < 5e-3

    # --- stochastic (bernoulli) mode -----------------------------------------
    SEED = 1234
    z_q_s, loss_s, _, z_b_s = binary_vector_quantizer_forward(
        h, proj_w, proj_b, embed_w, use_tanh=False, deterministic=False,
        seed=SEED)
    jax.block_until_ready((z_q_s, loss_s, z_b_s))
    noise = jax.random.uniform(jax.random.PRNGKey(SEED),
                               (B, codebook_size, W), dtype=jnp.float32)
    z_q_sr, loss_sr, z_b_sr = _reference_forward(
        h, proj_w, proj_b, embed_w, use_tanh=False, deterministic=False,
        noise=noise)
    zb_s = z_b_s.astype(jnp.float32)
    assert z_b_s.shape == (B, codebook_size, W)
    assert bool(jnp.all((zb_s == 0.0) | (zb_s == 1.0)))
    # Allow a tiny mismatch budget for u ~= p rounding-edge cases.
    mismatch = float(jnp.mean((zb_s != z_b_sr).astype(jnp.float32)))
    assert mismatch < 1e-3
    # z_q must be consistent with the kernel's own binary codes.
    z_q_chk = jnp.einsum('bnw,nd->bdw', zb_s, embed_w)
    assert jnp.allclose(z_q_s, z_q_chk, atol=1e-4, rtol=1e-4)
    assert jnp.allclose(loss_s, loss_sr, atol=1e-5, rtol=1e-5)

    print("KERNEL_OK")
</pallas_src>

<mosaic_0001>
module attributes {stable_mosaic.version = 11 : i64} {
  func.func @_bvq_kernel(%arg0: i32, %arg1: i32, %arg2: memref<1x32x128xf32, #tpu.memory_space<vmem>>, %arg3: memref<64x32xf32, #tpu.memory_space<vmem>>, %arg4: memref<64x1xf32, #tpu.memory_space<vmem>>, %arg5: memref<16x64xf32, #tpu.memory_space<vmem>>, %arg6: memref<1x16x128xf32, #tpu.memory_space<vmem>>, %arg7: memref<1x64x128xbf16, #tpu.memory_space<vmem>>, %arg8: memref<1x1x8x128xf32, #tpu.memory_space<vmem>>) attributes {dimension_semantics = [#tpu.dimension_semantics<parallel>, #tpu.dimension_semantics<parallel>], iteration_bounds = array<i64: 2, 1>, scalar_prefetch = 0 : i64, scratch_operands = 0 : i64, tpu.core_type = #tpu.core_type<tc>, window_params = [{transform_indices = @transform_0, window_bounds = array<i64: 1, 32, 128>}, {pipeline_mode = #tpu.pipeline_mode<synchronous>, transform_indices = @transform_1, window_bounds = array<i64: 64, 32>}, {pipeline_mode = #tpu.pipeline_mode<synchronous>, transform_indices = @transform_2, window_bounds = array<i64: 64, 1>}, {pipeline_mode = #tpu.pipeline_mode<synchronous>, transform_indices = @transform_3, window_bounds = array<i64: 16, 64>}, {transform_indices = @transform_4, window_bounds = array<i64: 1, 16, 128>}, {transform_indices = @transform_5, window_bounds = array<i64: 1, 64, 128>}, {transform_indices = @transform_6, window_bounds = array<i64: 1, 1, 8, 128>}]} {
    %c0 = arith.constant 0 : index
    %c0_0 = arith.constant 0 : index
    %0 = vector.load %arg3[%c0, %c0_0] : memref<64x32xf32, #tpu.memory_space<vmem>>, vector<64x32xf32>
    %c0_1 = arith.constant 0 : index
    %c0_2 = arith.constant 0 : index
    %c0_3 = arith.constant 0 : index
    %1 = vector.load %arg2[%c0_1, %c0_2, %c0_3] : memref<1x32x128xf32, #tpu.memory_space<vmem>>, vector<1x32x128xf32>
    %2 = vector.shape_cast %1 : vector<1x32x128xf32> to vector<32x128xf32>
    %cst = arith.constant dense<0.000000e+00> : vector<64x128xf32>
    %3 = tpu.matmul %0, %2, %cst {dimension_numbers = #tpu.dot_dimension_numbers<[1], [0], [0], [1], [0, 0, 1, 1], [], []>} : vector<64x32xf32>, vector<32x128xf32>, vector<64x128xf32> -> vector<64x128xf32>
    %c0_4 = arith.constant 0 : index
    %c0_5 = arith.constant 0 : index
    %4 = vector.load %arg4[%c0_4, %c0_5] : memref<64x1xf32, #tpu.memory_space<vmem>>, vector<64x1xf32>
    %5 = vector.broadcast %4 : vector<64x1xf32> to vector<64x128xf32>
    %6 = arith.addf %3, %5 : vector<64x128xf32>
    %c128_i32 = arith.constant 128 : i32
    %7 = arith.muli %arg1, %c128_i32 : i32
    %8 = tpu.iota {dimensions = array<i32: 1>} : vector<64x128xi32>
    %9 = vector.broadcast %7 : i32 to vector<64x128xi32>
    %10 = arith.addi %9, %8 : vector<64x128xi32>
    %c128_i32_6 = arith.constant 128 : i32
    %11 = vector.broadcast %c128_i32_6 : i32 to vector<64x128xi32>
    %12 = arith.cmpi slt, %10, %11 : vector<64x128xi32>
    %13 = arith.negf %6 : vector<64x128xf32>
    %14 = math.exp %13 : vector<64x128xf32>
    %cst_7 = arith.constant 1.000000e+00 : f32
    %15 = vector.broadcast %cst_7 : f32 to vector<64x128xf32>
    %16 = arith.addf %15, %14 : vector<64x128xf32>
    %17 = arith.divf %15, %16 : vector<64x128xf32>
    %18 = arith.negf %17 : vector<64x128xf32>
    %19 = math.exp %18 : vector<64x128xf32>
    %cst_8 = arith.constant 1.000000e+00 : f32
    %20 = vector.broadcast %cst_8 : f32 to vector<64x128xf32>
    %21 = arith.addf %20, %19 : vector<64x128xf32>
    %22 = arith.divf %20, %21 : vector<64x128xf32>
    %cst_9 = arith.constant 1.000000e+00 : f32
    %23 = vector.broadcast %cst_9 : f32 to vector<64x128xf32>
    %24 = arith.subf %23, %22 : vector<64x128xf32>
    %25 = arith.mulf %22, %24 : vector<64x128xf32>
    %cst_10 = arith.constant 0.000000e+00 : f32
    %26 = vector.broadcast %cst_10 : f32 to vector<64x128xf32>
    %27 = arith.select %12, %25, %26 : vector<64x128xi1>, vector<64x128xf32>
    %28 = vector.shape_cast %27 : vector<64x128xf32> to vector<1x64x128xf32>
    %cst_11 = arith.constant dense<0.000000e+00> : vector<1xf32>
    %29 = vector.multi_reduction <add>, %28, %cst_11 [1, 2] : vector<1x64x128xf32> to vector<1xf32>
    %30 = vector.shape_cast %29 : vector<1xf32> to vector<1x1x1xf32>
    %31 = vector.extract %30[0, 0, 0] : f32 from vector<1x1x1xf32>
    %32 = vector.broadcast %31 : f32 to vector<8x128xf32>
    %c0_12 = arith.constant 0 : index
    %c0_13 = arith.constant 0 : index
    %c0_14 = arith.constant 0 : index
    %c0_15 = arith.constant 0 : index
    %33 = vector.load %arg8[%c0_12, %c0_13, %c0_14, %c0_15] : memref<1x1x8x128xf32, #tpu.memory_space<vmem>>, vector<1x1x8x128xf32>
    %34 = vector.shape_cast %33 : vector<1x1x8x128xf32> to vector<8x128xf32>
    %35 = vector.shape_cast %32 : vector<8x128xf32> to vector<1x1x8x128xf32>
    tpu.vector_store %arg8[%c0_12, %c0_13, %c0_14, %c0_15], %35 {strides = array<i32>} : memref<1x1x8x128xf32, #tpu.memory_space<vmem>>, vector<1x1x8x128xf32>,
    %cst_16 = arith.constant 0.000000e+00 : f32
    %36 = vector.broadcast %cst_16 : f32 to vector<64x128xf32>
    %37 = arith.cmpf ogt, %6, %36 : vector<64x128xf32>
    %cst_17 = arith.constant 1.000000e+00 : f32
    %cst_18 = arith.constant 0.000000e+00 : f32
    %38 = vector.broadcast %cst_17 : f32 to vector<64x128xf32>
    %39 = vector.broadcast %cst_18 : f32 to vector<64x128xf32>
    %40 = arith.select %37, %38, %39 : vector<64x128xi1>, vector<64x128xf32>
    %41 = arith.truncf %40 : vector<64x128xf32> to vector<64x128xbf16>
    %c0_19 = arith.constant 0 : index
    %c0_20 = arith.constant 0 : index
    %c0_21 = arith.constant 0 : index
    %42 = vector.load %arg7[%c0_19, %c0_20, %c0_21] : memref<1x64x128xbf16, #tpu.memory_space<vmem>>, vector<1x64x128xbf16>
    %43 = vector.shape_cast %42 : vector<1x64x128xbf16> to vector<64x128xbf16>
    %44 = vector.shape_cast %41 : vector<64x128xbf16> to vector<1x64x128xbf16>
    tpu.vector_store %arg7[%c0_19, %c0_20, %c0_21], %44 {strides = array<i32>} : memref<1x64x128xbf16, #tpu.memory_space<vmem>>, vector<1x64x128xbf16>,
    %c0_22 = arith.constant 0 : index
    %c0_23 = arith.constant 0 : index
    %45 = vector.load %arg5[%c0_22, %c0_23] : memref<16x64xf32, #tpu.memory_space<vmem>>, vector<16x64xf32>
    %cst_24 = arith.constant dense<0.000000e+00> : vector<16x128xf32>
    %46 = tpu.matmul %45, %40, %cst_24 {dimension_numbers = #tpu.dot_dimension_numbers<[1], [0], [0], [1], [0, 0, 1, 1], [], []>} : vector<16x64xf32>, vector<64x128xf32>, vector<16x128xf32> -> vector<16x128xf32>
    %c0_25 = arith.constant 0 : index
    %c0_26 = arith.constant 0 : index
    %c0_27 = arith.constant 0 : index
    %47 = vector.load %arg6[%c0_25, %c0_26, %c0_27] : memref<1x16x128xf32, #tpu.memory_space<vmem>>, vector<1x16x128xf32>
    %48 = vector.shape_cast %47 : vector<1x16x128xf32> to vector<16x128xf32>
    %49 = vector.shape_cast %46 : vector<16x128xf32> to vector<1x16x128xf32>
    tpu.vector_store %arg6[%c0_25, %c0_26, %c0_27], %49 {strides = array<i32>} : memref<1x16x128xf32, #tpu.memory_space<vmem>>, vector<1x16x128xf32>,
    return
  }
  func.func @transform_0(%arg0: i32, %arg1: i32) -> (i32, i32, i32) {
    %c0_i32 = arith.constant 0 : i32
    %c0_i32_0 = arith.constant 0 : i32
    return %arg0, %c0_i32, %arg1 : i32, i32, i32
  }
  func.func @transform_1(%arg0: i32, %arg1: i32) -> (i32, i32) {
    %c0_i32 = arith.constant 0 : i32
    %c0_i32_0 = arith.constant 0 : i32
    %c0_i32_1 = arith.constant 0 : i32
    return %c0_i32, %c0_i32_0 : i32, i32
  }
  func.func @transform_2(%arg0: i32, %arg1: i32) -> (i32, i32) {
    %c0_i32 = arith.constant 0 : i32
    %c0_i32_0 = arith.constant 0 : i32
    %c0_i32_1 = arith.constant 0 : i32
    return %c0_i32, %c0_i32_0 : i32, i32
  }
  func.func @transform_3(%arg0: i32, %arg1: i32) -> (i32, i32) {
    %c0_i32 = arith.constant 0 : i32
    %c0_i32_0 = arith.constant 0 : i32
    %c0_i32_1 = arith.constant 0 : i32
    return %c0_i32, %c0_i32_0 : i32, i32
  }
  func.func @transform_4(%arg0: i32, %arg1: i32) -> (i32, i32, i32) {
    %c0_i32 = arith.constant 0 : i32
    %c0_i32_0 = arith.constant 0 : i32
    return %arg0, %c0_i32, %arg1 : i32, i32, i32
  }
  func.func @transform_5(%arg0: i32, %arg1: i32) -> (i32, i32, i32) {
    %c0_i32 = arith.constant 0 : i32
    %c0_i32_0 = arith.constant 0 : i32
    return %arg0, %c0_i32, %arg1 : i32, i32, i32
  }
  func.func @transform_6(%arg0: i32, %arg1: i32) -> (i32, i32, i32, i32) {
    %c0_i32 = arith.constant 0 : i32
    %c0_i32_0 = arith.constant 0 : i32
    %c0_i32_1 = arith.constant 0 : i32
    return %arg0, %arg1, %c0_i32, %c0_i32_0 : i32, i32, i32, i32
  }
}

</mosaic_0001>

<bundles_post_ra>
// kernel: tpu_custom_call.1
= control target key start
LH: loop header
LB: loop body
LE: loop exit
PB: predicated region body
PF: predicated region fallthrough
CT: control target
= control target key end

     0   :  { %s1741_s0 = inlined_call_operand.vmem [shape: f32[2,32,128], index: 0, kind: input, shape index: {}]   ;;  %s1742_s1 = inlined_call_operand.vmem [shape: f32[64,32], index: 1, kind: input, shape index: {}]   ;;  %s1743_s2 = inlined_call_operand.vmem [shape: f32[64,1], index: 2, kind: input, shape index: {}]   ;;  %s1744_s3 = inlined_call_operand.vmem [shape: f32[16,64], index: 3, kind: input, shape index: {}]   ;;  %s1745_s4 = inlined_call_operand.hbm [shape: f32[2,16,128], index: 4, kind: output, shape index: {0}]   ;;  %s1746_s5 = inlined_call_operand.hbm [shape: bf16[2,64,128], index: 5, kind: output, shape index: {1}]   ;;  %s1747_s6 = inlined_call_operand.hbm [shape: f32[2,1,8,128], index: 6, kind: output, shape index: {2}]  }
   0x1   :  { %1750 = sst [smem:[#allocation9_spill]] %s1741_s0 }
   0x2   :  { %1751 = sst [smem:[#allocation10_spill]] %s1742_s1 }
   0x3   :  { %12 = vsyncpa [#allocation3], 0 }
   0x4   :  { %14 = vsyncpa [#allocation3 + $0x1], 0 }
   0x5   :  { %15 = vsyncpa [#allocation5], 0 }
   0x6   :  { %17 = vsyncpa [#allocation5 + $0x1], 0  ;;  %s1469_s21 = smov 0   ;;  %s1471_s22 = smov 0  }
   0x7   :  { %s1473_s23 = smov 0   ;;  %s1475_s24 = smov 0  }
   0x8   :  { %s1477_s25 = smov 0   ;;  %s1479_s26 = smov 0  }
   0x9 LB: > { %s971_s27 = sadd.s32 4294967295, %s1422_s26   ;;  %s1748_s28 = sadd.s32 4294967294, %s1422_s26   ;;  %s1422_s26 = sphi %s1479_s26, %s23_s26   ;;  %s1418_s25 = sphi %s1477_s25, %s1762_s25   ;;  %s1414_s24 = sphi %s1475_s24, %s1761_s24   ;;  %s1410_s23 = sphi %s1473_s23, %s1760_s23   ;;  %s1406_s22 = sphi %s1471_s22, %s1759_s22   ;;  %s1402_s21 = sphi %s1469_s21, %s1758_s21  }
   0xa   : > { %s35_s29 = sadd.s32 1, %s1418_s25  ;;  %s135_s30 = sadd.s32 1, %s1410_s23 }
   0xb   : > { %p37_p0 = scmp.ge.s32.totalorder %s35_s29, 2  ;;  %p145_p1 = scmp.ne.s32.totalorder %s1410_s23, %s1406_s22 }
   0xc   : > { %p146_p2 = scmp.eq.s32.totalorder %s971_s27, 1  ;;  %p151_p3 = scmp.ne.s32.totalorder %s1406_s22, %s1402_s21 }
   0xd   : > { %s1764_s29 = smov (%p37_p0, %s35_s29), 0  ;;  %p152_p5 = scmp.eq.s32.totalorder %s1748_s28, 1 }
   0xe   : > { %p1511_p4 = por %p146_p2, %p145_p1  ;;  %s130_s8 = ssub.s32 %s1418_s25, %s1764_s29 }
   0xf   : > { %p975_p6 = scmp.ge.s32.totalorder %s1422_s26, 1  ;;  %p133_p7 = scmp.eq.s32.totalorder %s130_s8, 0 }
  0x10   : > { %p1520_p8 = por %p152_p5, %p151_p3  ;;  %p246_p9 = scmp.lt.s32.totalorder %s1422_s26, 3 }
  0x11   : > { %s1526_s10 = scalar_select %p133_p7, %s1410_s23, %s135_s30  }
  0x12   : > { %p247_p10 = pnand %p975_p6, %p246_p9 }
  0x13   : > { %p289_p11 = scmp.lt.s32.totalorder (!%p247_p10), %s1414_s24, 1  ;;  %s1754_s1 = sld [smem:[#allocation10_spill]] (!%p247_p10)  ;;  %vm357_vm0 = vcmask (!%p247_p10), 261120   ;;  %v1424_v1 = vmov (!%p247_p10), 0   ;;  %v309_v2 = vld [vmem:[%s1743_s2] sm:$0xff] (!%p247_p10)  ;;  %v311_v3 = vld [vmem:[%s1743_s2 + $0x10] sm:$0xff] (!%p247_p10) }
  0x14   : > { %250 = sbr.rel (%p247_p10) target bundleno = 551 (0x227), region = 36  ;;  %1218 = vset.pattern.permute.xlu0 (!%p247_p10), %v1424_v1  ;;  %1219 = vset.pattern.permute.xlu1 (!%p247_p10), %v1424_v1  ;;  %v310_v4 = vld [vmem:[%s1743_s2 + $0x8] sm:$0xff] (!%p247_p10)  ;;  %s1755_s0 = sld [smem:[#allocation9_spill]] (!%p247_p10)  ;;  %v312_v5 = vld [vmem:[%s1743_s2 + $0x18] sm:$0xff] (!%p247_p10)  ;;  %v313_v12 = vld [vmem:[%s1743_s2 + $0x20] sm:$0xff] (!%p247_p10)  ;;  %vm689_vm1 = vcmask (!%p247_p10), 523264  }
  0x15   : > { %319 = vperm.xlu0 (!%p247_p10), %1218, %v309_v2   ;;  %329 = vperm.xlu1 (!%p247_p10), %1219, %v311_v3   ;;  %v314_v13 = vld [vmem:[%s1743_s2 + $0x28] sm:$0xff] (!%p247_p10)  ;;  %v315_v14 = vld [vmem:[%s1743_s2 + $0x30] sm:$0xff] (!%p247_p10)  ;;  %v316_v15 = vld [vmem:[%s1743_s2 + $0x38] sm:$0xff] (!%p247_p10)  ;;  %v1425_v35 = vmov (!%p247_p10), 0.0   ;;  %v1426_v43 = vmov (!%p247_p10), 1.0|1.0  }
  0x16   : > { %v687_v23 = vld [vmem:[%s1744_s3] sm:$0xff] (!%p247_p10)  ;;  %s1618_s28 = sand.u32 (!%p247_p10), 1, %s971_s27   ;;  %s1043_s17 = sshll.u32 (!%p247_p10), %s1414_s24, 9 }
  0x17   : > { %1117 = vmatprep.mubr.msk.f32.mxu1 (!%p247_p10), %vm689_vm1, %v687_v23  ;;  %s1626_s20 = scalar_lea.hbm (!%p247_p10), %s1746_s5, %s1043_s17  ;;  %s1749_s30 = scalar_lea.sflag (!%p247_p10), [#allocation5], %s1618_s28 }
  0x18   : > { %s1427_s27 = smov (!%p247_p10), [#allocation4]  }
  0x19   : > { %v297_v0 = vld [vmem:[%s1754_s1] sm:$0xff] (!%p247_p10)  ;;  %324 = vperm.xlu0 (!%p247_p10), %1218, %v310_v4   ;;  %334 = vperm.xlu1 (!%p247_p10), %1219, %v312_v5   ;;  %v298_v16 = vld [vmem:[%s1754_s1 + $0x8] sm:$0xff] (!%p247_p10)  ;;  %v299_v17 = vld [vmem:[%s1754_s1 + $0x10] sm:$0xff] (!%p247_p10) }
  0x1a   : > { %1089 = vmatprep.mubr.msk.f32.mxu0 (!%p247_p10), %vm357_vm0, %v297_v0  ;;  %v300_v18 = vld [vmem:[%s1754_s1 + $0x18] sm:$0xff] (!%p247_p10)  ;;  %v301_v19 = vld [vmem:[%s1754_s1 + $0x20] sm:$0xff] (!%p247_p10)  ;;  %v302_v20 = vld [vmem:[%s1754_s1 + $0x28] sm:$0xff] (!%p247_p10) }
  0x1b   : > { %s290_s13 = scalar_select %p289_p11, %s1414_s24, 1  ;;  %v303_v21 = vld [vmem:[%s1754_s1 + $0x30] sm:$0xff]  ;;  %v304_v22 = vld [vmem:[%s1754_s1 + $0x38] sm:$0xff] }
  0x1d   : > { %s1033_s18 = sshll.u32 %s290_s13, 5  ;;  %339 = vperm.xlu0 %1218, %v313_v12   ;;  %344 = vperm.xlu1 %1219, %v314_v13  }
  0x1e   : > { %s296_s11 = scalar_lea.vmem %s1755_s0, %s1033_s18 }
  0x1f   : > { %v305_v6 = vld [vmem:[%s296_s11] sm:$0xff]  ;;  %v306_v7 = vld [vmem:[%s296_s11 + $0x8] sm:$0xff]  ;;  %v307_v8 = vld [vmem:[%s296_s11 + $0x10] sm:$0xff] }
  0x20   : > { %v1120_v9 = vpack.c.bf16 %v306_v7, %v305_v6  ;;  %v308_v10 = vld [vmem:[%s296_s11 + $0x18] sm:$0xff]  ;;  %s1594_s11 = sand.u32 1, %s1406_s22  }
  0x21   : > { %v1124_v11 = vpack.c.bf16 %v308_v10, %v307_v8  ;;  %349 = vperm.xlu0 %1218, %v315_v14   ;;  %354 = vperm.xlu1 %1219, %v316_v15   ;;  %s977_s12 = sshll.u32 %s1594_s11, 5 }
  0x22   : > { %1121 = vmatprep.subr.bf16.mxu0 %v1120_v9  ;;  %s1600_s13 = scalar_lea.vmem [#allocation4], %s977_s12  ;;  %s1288_s12 = sshll.u32 %s1427_s27, 4  ;;  %s1289_s12 = int_to_ptr.vmem [resolvable:$false] %s1288_s12 }
  0x23   : > { %1123 = vmatpush3.bf16.msra.mxu0 %v1120_v9  ;;  %s815_s16 = sshll.u32 %s1600_s13, 4  ;;  %s1621_s16 = int_to_ptr.vmem [resolvable:$true] %s815_s16 }
  0x24   : > { %1125 = vmatprep.subr.bf16.mxu0 %v1124_v11  ;;  %s1284_s8 = scalar_lea.vmem %s1621_s16, 512  ;;  %p1291_p1 = scmp.lt.s32.totalorder %s1621_s16, %s1289_s12 }
  0x25   : > { %p1285_p12 = scmp.ne.s32.totalorder %s1621_s16, %s1284_s8 }
  0x27   : > { %1127 = vmatpush3.bf16.msra.mxu0 %v1124_v11  ;;  %v688_v11 = vld [vmem:[%s1744_s3 + $0x8] sm:$0xff]  ;;  %p1286_p13 = pnand %p1285_p12, %p1511_p4 }
  0x29   : > { %p1287_p0 = pneg %p1286_p13 }
  0x2a   : > { %1090 = vmatmul.mubr.msk.f32.vlgmr.msra.gmra.mrb[0].mxu0 %vm357_vm0, %v298_v16 }
  0x2b   : > { %1092 = vmatprep.mubr.msk.f32.mxu0 %vm357_vm0, %v299_v17 }
  0x2e   : > { %1093 = vmatmul.mubr.msk.f32.gmra.mrb[2].mxu0 %vm357_vm0, %v300_v18 }
  0x2f   : > { %1095 = vmatprep.mubr.msk.f32.mxu0 %vm357_vm0, %v301_v19 }
  0x32   : > { %1096 = vmatmul.mubr.msk.f32.gmra.mrb[4].mxu0 %vm357_vm0, %v302_v20 }
  0x33   : > { %1098 = vmatprep.mubr.msk.f32.mxu0 %vm357_vm0, %v303_v21 }
  0x36   : > { %1099 = vmatmul.mubr.msk.f32.gmra.mrb[6].mxu0 %vm357_vm0, %v304_v22 }
  0x94   : > { %v320_v24 = vpop.permute.xlu0 %319  ;;  %v330_v25 = vpop.permute.xlu1 %329 }
  0x98   : > { %v325_v26 = vpop.permute.xlu0 %324  ;;  %v335_v27 = vpop.permute.xlu1 %334 }
  0x9c   : > { %v345_v40 = vpop.permute.xlu1 %344  ;;  %v340_v44 = vpop.permute.xlu0 %339 }
  0xa0   : > { %v355_v55 = vpop.permute.xlu1 %354  ;;  %v350_v59 = vpop.permute.xlu0 %349 }
  0xfd   : > { %v1091_v28 = vpop.f32.mrb[0].mxu0 }
  0xfe   : > { %v454_v29 = vadd.f32 %v1091_v28, %v325_v26  ;;  %v448_v30 = vpop.f32.mrb[1].mxu0 }
  0xff   : > { %v449_v31 = vadd.f32 %v448_v30, %v320_v24 }
 0x100   : > { %v990_v32 = vmul.f32 -1.442695, %v454_v29  ;;  %vm632_vm2 = vcmp.gt.f32.partialorder %v454_v29, 0.0 }
 0x101   : > { %v989_v33 = vmul.f32 -1.442695, %v449_v31  ;;  %v1094_v34 = vpop.f32.mrb[2].mxu0  ;;  %vm631_vm3 = vcmp.gt.f32.partialorder %v449_v31, 0.0  ;;  %v640_v36 = vsel %vm632_vm2, 1.0, %v1425_v35 }
 0x102   : > { %1220 = vpow2.f32 %v990_v32  ;;  %v464_v37 = vadd.f32 %v1094_v34, %v335_v27  ;;  %v458_v38 = vpop.f32.mrb[3].mxu0  ;;  %v639_v39 = vsel %vm631_vm3, 1.0, %v1425_v35  ;;  %vm1128_vm4 = vmpackc.low %vm632_vm2, %vm631_vm3 }
 0x103   : > { %1222 = vpow2.f32 %v989_v33  ;;  %v459_v41 = vadd.f32 %v458_v38, %v330_v25  ;;  %v1045_v42 = vpack.c.bf16 %v640_v36, %v639_v39  ;;  %1129 = vmatprep.subr.msk.bf16.mxu1 %vm1128_vm4, %v1426_v43 }
 0x104   : > { %v992_v45 = vmul.f32 -1.442695, %v464_v37  ;;  %vm634_vm5 = vcmp.gt.f32.partialorder %v464_v37, 0.0  ;;  %1131 = vmatpush3.bf16.msk.msra.mxu1 %vm1128_vm4, %v1426_v43 }
 0x105   : > { %v642_v46 = vsel %vm634_vm5, 1.0, %v1425_v35  ;;  %v991_v47 = vmul.f32 -1.442695, %v459_v41  ;;  %vm633_vm6 = vcmp.gt.f32.partialorder %v459_v41, 0.0  ;;  %1046 = vst [vmem:[%s1600_s13] sm:$0xff] %v1045_v42   ;;  %v1097_v48 = vpop.f32.mrb[4].mxu0 }
 0x106   : > { %1224 = vpow2.f32 %v992_v45  ;;  %v641_v49 = vsel %vm633_vm6, 1.0, %v1425_v35  ;;  %v474_v50 = vadd.f32 %v1097_v48, %v345_v40  ;;  %v468_v51 = vpop.f32.mrb[5].mxu0  ;;  %vm1132_vm7 = vmpackc.low %vm634_vm5, %vm633_vm6 }
 0x107   : > { %1226 = vpow2.f32 %v991_v47  ;;  %v1048_v52 = vpack.c.bf16 %v642_v46, %v641_v49  ;;  %v469_v53 = vadd.f32 %v468_v51, %v340_v44  ;;  %1133 = vmatprep.subr.msk.bf16.mxu1 %vm1132_vm7, %v1426_v43 }
 0x108   : > { %v994_v54 = vmul.f32 -1.442695, %v474_v50  ;;  %vm636_vm8 = vcmp.gt.f32.partialorder %v474_v50, 0.0  ;;  %1135 = vmatpush3.bf16.msk.msra.mxu1 %vm1132_vm7, %v1426_v43 }
 0x109   : > { %1056 = vst [vmem:[%s1600_s13 + $0x8] sm:$0xff] %v1048_v52   ;;  %v644_v56 = vsel %vm636_vm8, 1.0, %v1425_v35  ;;  %v993_v57 = vmul.f32 -1.442695, %v469_v53  ;;  %vm635_vm9 = vcmp.gt.f32.partialorder %v469_v53, 0.0  ;;  %v1100_v58 = vpop.f32.mrb[6].mxu0 }
 0x10a   : > { %1228 = vpow2.f32 %v994_v54  ;;  %v643_v60 = vsel %vm635_vm9, 1.0, %v1425_v35  ;;  %v484_v61 = vadd.f32 %v1100_v58, %v355_v55  ;;  %v478_v62 = vpop.f32.mrb[7].mxu0  ;;  %vm1136_vm10 = vmpackc.low %vm636_vm8, %vm635_vm9 }
 0x10b   : > { %1230 = vpow2.f32 %v993_v57  ;;  %v1051_v63 = vpack.c.bf16 %v644_v56, %v643_v60  ;;  %v479_v0 = vadd.f32 %v478_v62, %v350_v59  ;;  %1137 = vmatprep.subr.msk.bf16.mxu1 %vm1136_vm10, %v1426_v43 }
 0x10c   : > { %v1221_v1 = vpop.eup %1220  ;;  %v996_v2 = vmul.f32 -1.442695, %v484_v61  ;;  %vm638_vm11 = vcmp.gt.f32.partialorder %v484_v61, 0.0  ;;  %1139 = vmatpush3.bf16.msk.msra.mxu1 %vm1136_vm10, %v1426_v43 }
 0x10d   : > { %v1223_v3 = vpop.eup %1222  ;;  %v518_v4 = vadd.f32 1.0, %v1221_v1  ;;  %1057 = vst [vmem:[%s1600_s13 + $0x10] sm:$0xff] %v1051_v63   ;;  %v646_v5 = vsel %vm638_vm11, 1.0, %v1425_v35  ;;  %v995_v6 = vmul.f32 -1.442695, %v479_v0  ;;  %vm637_vm12 = vcmp.gt.f32.partialorder %v479_v0, 0.0 }
 0x10e   : > { %v517_v7 = vadd.f32 1.0, %v1223_v3  ;;  %1232 = vpow2.f32 %v996_v2  ;;  %v645_v8 = vsel %vm637_vm12, 1.0, %v1425_v35  ;;  %vm1140_vm13 = vmpackc.low %vm638_vm11, %vm637_vm12 }
 0x10f   : > { %1234 = vrcp.f32 %v518_v4  ;;  %v1054_v9 = vpack.c.bf16 %v646_v5, %v645_v8  ;;  %1141 = vmatprep.subr.msk.bf16.mxu1 %vm1140_vm13, %v1426_v43 }
 0x110   : > { %v1225_v10 = vpop.eup %1224  ;;  %1236 = vrcp.f32 %v517_v7  ;;  %1143 = vmatpush3.bf16.msk.msra.mxu1 %vm1140_vm13, %v1426_v43 }
 0x111   : > { %v1227_v12 = vpop.eup %1226  ;;  %v520_v13 = vadd.f32 1.0, %v1225_v10  ;;  %1238 = vpow2.f32 %v995_v6  ;;  %1058 = vst [vmem:[%s1600_s13 + $0x18] sm:$0xff] %v1054_v9   ;;  %s1290_s13 = scalar_lea.vmem %s1289_s12, 1024 }
 0x112   : > { %v519_v14 = vadd.f32 1.0, %v1227_v12  ;;  %p1292_p2 = scmp.lt.s32.totalorder %s1290_s13, %s1284_s8 }
 0x113   : > { %1240 = vrcp.f32 %v520_v13  ;;  %1118 = vmatmul.mubr.msk.f32.vlgmr.msra.gmra.mrb[0].mxu1 %vm689_vm1, %v688_v11 }
 0x114   : > { %v1229_v15 = vpop.eup %1228  ;;  %1242 = vrcp.f32 %v519_v14  ;;  %p1293_p3 = por %p1292_p2, %p1291_p1 }
 0x115   : > { %v1231_v16 = vpop.eup %1230  ;;  %v522_v17 = vadd.f32 1.0, %v1229_v15 }
 0x116   : > { %v521_v18 = vadd.f32 1.0, %v1231_v16  ;;  %p1294_p5 = pnand %p1293_p3, %p1287_p0 }
 0x117   : > { %1244 = vrcp.f32 %v522_v17 }
 0x118   : > { %v1233_v19 = vpop.eup %1232  ;;  %1246 = vrcp.f32 %v521_v18 }
 0x119   : > { %v1235_v20 = vpop.eup %1234  ;;  %v524_v21 = vadd.f32 1.0, %v1233_v19 }
 0x11a   : > { %v1237_v22 = vpop.eup %1236  ;;  %v998_v23 = vmul.f32 -1.442695, %v1235_v20 }
 0x11b   : > { %v1239_v24 = vpop.eup %1238  ;;  %v997_v25 = vmul.f32 -1.442695, %v1237_v22  ;;  %1248 = vrcp.f32 %v524_v21 }
 0x11c   : > { %1250 = vpow2.f32 %v998_v23  ;;  %v523_v26 = vadd.f32 1.0, %v1239_v24 }
 0x11d   : > { %v1241_v27 = vpop.eup %1240  ;;  %1252 = vpow2.f32 %v997_v25 }
 0x11e   : > { %v1243_v28 = vpop.eup %1242  ;;  %v1000_v29 = vmul.f32 -1.442695, %v1241_v27  ;;  %1254 = vrcp.f32 %v523_v26 }
 0x11f   : > { %v999_v30 = vmul.f32 -1.442695, %v1243_v28 }
 0x120   : > { %1256 = vpow2.f32 %v1000_v29 }
 0x121   : > { %v1245_v31 = vpop.eup %1244  ;;  %1258 = vpow2.f32 %v999_v30 }
 0x122   : > { %v1247_v32 = vpop.eup %1246  ;;  %v1002_v33 = vmul.f32 -1.442695, %v1245_v31 }
 0x123   : > { %v1001_v34 = vmul.f32 -1.442695, %v1247_v32 }
 0x124   : > { %1260 = vpow2.f32 %v1002_v33 }
 0x125   : > { %v1249_v35 = vpop.eup %1248  ;;  %1262 = vpow2.f32 %v1001_v34 }
 0x126   : > { %v1251_v36 = vpop.eup %1250  ;;  %v1004_v37 = vmul.f32 -1.442695, %v1249_v35 }
 0x127   : > { %v1253_v38 = vpop.eup %1252  ;;  %v566_v39 = vadd.f32 1.0, %v1251_v36 }
 0x128   : > { %v1255_v40 = vpop.eup %1254  ;;  %v565_v41 = vadd.f32 1.0, %v1253_v38  ;;  %1264 = vpow2.f32 %v1004_v37 }
 0x129   : > { %1266 = vrcp.f32 %v566_v39  ;;  %v1003_v42 = vmul.f32 -1.442695, %v1255_v40 }
 0x12a   : > { %v1257_v43 = vpop.eup %1256  ;;  %1268 = vrcp.f32 %v565_v41 }
 0x12b   : > { %v1259_v44 = vpop.eup %1258  ;;  %v568_v45 = vadd.f32 1.0, %v1257_v43  ;;  %1270 = vpow2.f32 %v1003_v42 }
 0x12c   : > { %v567_v46 = vadd.f32 1.0, %v1259_v44 }
 0x12d   : > { %1272 = vrcp.f32 %v568_v45 }
 0x12e   : > { %v1261_v47 = vpop.eup %1260  ;;  %1274 = vrcp.f32 %v567_v46 }
 0x12f   : > { %v1263_v48 = vpop.eup %1262  ;;  %v570_v49 = vadd.f32 1.0, %v1261_v47 }
 0x130   : > { %v569_v50 = vadd.f32 1.0, %v1263_v48 }
 0x131   : > { %1276 = vrcp.f32 %v570_v49 }
 0x132   : > { %v1265_v51 = vpop.eup %1264  ;;  %1278 = vrcp.f32 %v569_v50 }
 0x133   : > { %v1267_v52 = vpop.eup %1266  ;;  %v572_v53 = vadd.f32 1.0, %v1265_v51 }
 0x134   : > { %v1269_v54 = vpop.eup %1268  ;;  %v590_v55 = vsub.f32 1.0, %v1267_v52 }
 0x135   : > { %v1271_v56 = vpop.eup %1270  ;;  %v589_v57 = vsub.f32 1.0, %v1269_v54  ;;  %1280 = vrcp.f32 %v572_v53 }
 0x136   : > { %v571_v58 = vadd.f32 1.0, %v1271_v56  ;;  %v598_v59 = vmul.f32 %v1267_v52, %v590_v55 }
 0x137   : > { %v1273_v60 = vpop.eup %1272  ;;  %v597_v61 = vmul.f32 %v1269_v54, %v589_v57 }
 0x138   : > { %v1275_v62 = vpop.eup %1274  ;;  %1282 = vrcp.f32 %v571_v58  ;;  %v592_v0 = vsub.f32 1.0, %v1273_v60 }
 0x139   : > { %v591_v63 = vsub.f32 1.0, %v1275_v62  ;;  %v613_v1 = vadd.f32 %v598_v59, %v597_v61 }
 0x13a   : > { %v600_v7 = vmul.f32 %v1273_v60, %v592_v0 }
 0x13b   : > { %v1277_v2 = vpop.eup %1276  ;;  %v599_v3 = vmul.f32 %v1275_v62, %v591_v63 }
 0x13c   : > { %v1279_v4 = vpop.eup %1278  ;;  %v594_v6 = vsub.f32 1.0, %v1277_v2 }
 0x13d   : > { %v593_v5 = vsub.f32 1.0, %v1279_v4  ;;  %v614_v8 = vadd.f32 %v613_v1, %v599_v3 }
 0x13e   : > { %v602_v12 = vmul.f32 %v1277_v2, %v594_v6 }
 0x13f   : > { %v601_v9 = vmul.f32 %v1279_v4, %v593_v5  ;;  %v615_v10 = vadd.f32 %v614_v8, %v600_v7  ;;  %v1281_v11 = vpop.eup %1280 }
 0x140   : > { %v596_v16 = vsub.f32 1.0, %v1281_v11 }
 0x141   : > { %v616_v13 = vadd.f32 %v615_v10, %v601_v9 }
 0x142   : > { %v1283_v14 = vpop.eup %1282  ;;  %v604_v19 = vmul.f32 %v1281_v11, %v596_v16 }
 0x143   : > { %v595_v15 = vsub.f32 1.0, %v1283_v14  ;;  %v617_v17 = vadd.f32 %v616_v13, %v602_v12 }
 0x145   : > { %v603_v18 = vmul.f32 %v1283_v14, %v595_v15 }
 0x147   : > { %v618_v20 = vadd.f32 %v617_v17, %v603_v18 }
 0x149   : > { %v619_v21 = vadd.f32 %v618_v20, %v604_v19 }
 0x14b   : > { %620 = vadd.xlane.f32.xlu0 %v619_v21 }
 0x14c   : > { %1297 = shalt.err (!%p1294_p5)
}
 0x14d   : > { %s1298_s14 = scalar_lea.hbm %s1626_s20, 512  ;;  %s1302_s18 = scalar_lea.hbm %s1746_s5, 1024 }
 0x14e   : > { %p1299_p6 = scmp.ne.s32.totalorder %s1626_s20, %s1298_s14  ;;  %p1303_p10 = scmp.lt.u32.totalorder %s1626_s20, %s1746_s5 }
 0x14f   : > { %p1304_p11 = scmp.lt.u32.totalorder %s1302_s18, %s1298_s14  ;;  %p1306_p13 = scmp.lt.u32.totalorder %s1298_s14, %s1626_s20 }
 0x150   : > { %p1300_p7 = pnand %p1299_p6, %p1511_p4 }
 0x151   : > { %p1305_p12 = por %p1304_p11, %p1303_p10 }
 0x152   : > { %p1301_p9 = pneg %p1300_p7 }
 0x153   : > { %p1307_p0 = por %p1306_p13, %p1305_p12 }
 0x155   : > { %p1308_p1 = pnand %p1307_p0, %p1301_p9 }
 0x157   : > { %1311 = shalt.err (!%p1308_p1)
}
 0x158   : > { %s1428_s8 = smov 64   ;;  %s1429_s12 = smov 4  }
 0x159   : > { %1147 = dma.vmem_to_hbm [thread:$0]  (%p1511_p4), %s1621_s16, 512, %s1626_s20, %s1749_s30, %s1428_s8, %s1428_s8, %s1429_s12  }
 0x15a   : > { %s976_s13 = sshll.u32 %s1594_s11, 4  ;;  %s1042_s17 = sshll.u32 %s1414_s24, 8 }
 0x15b   : > { %s274_s14 = scalar_lea.vmem [#allocation2], %s976_s13  ;;  %s1659_s18 = scalar_lea.hbm %s1745_s4, %s1042_s17 }
 0x15c   : > { %s798_s15 = sshll.u32 %s274_s14, 4  ;;  %s774_s19 = scalar_lea.sflag [#allocation3], %s1594_s11  ;;  %s1654_s15 = int_to_ptr.vmem [resolvable:$true] %s798_s15 }
 0x15d   : > { %s1312_s27 = scalar_lea.vmem %s1654_s15, 256  ;;  %s1430_s8 = smov [#allocation2]  }
 0x15e   : > { %p1313_p2 = scmp.ne.s32.totalorder %s1654_s15, %s1312_s27  ;;  %s1316_s12 = sshll.u32 %s1430_s8, 4  ;;  %s1317_s12 = int_to_ptr.vmem [resolvable:$false] %s1316_s12 }
 0x15f   : > { %s1318_s13 = scalar_lea.vmem %s1317_s12, 512  ;;  %p1319_p6 = scmp.lt.s32.totalorder %s1654_s15, %s1317_s12 }
 0x160   : > { %p1314_p3 = pnand %p1313_p2, %p1511_p4  ;;  %p1320_p7 = scmp.lt.s32.totalorder %s1318_s13, %s1312_s27 }
 0x162   : > { %p1315_p5 = pneg %p1314_p3  ;;  %p1321_p9 = por %p1320_p7, %p1319_p6 }
 0x164   : > { %p1322_p10 = pnand %p1321_p9, %p1315_p5 }
 0x1d8   : > { %v621_v22 = vpop.xlane.xlu0 %620 }
 0x1d9   : > { %v622_v23 = vrot.slane %v621_v22, 4 }
 0x1db   : > { %v623_v24 = vadd.f32 %v622_v23, %v621_v22 }
 0x1dd   : > { %v624_v25 = vrot.slane %v623_v24, 2 }
 0x1df   : > { %v625_v26 = vadd.f32 %v624_v25, %v623_v24 }
 0x1e1   : > { %v626_v27 = vrot.slane %v625_v26, 1 }
 0x1e3   : > { %v627_v28 = vadd.f32 %v626_v27, %v625_v26 }
 0x1e5   : > { %1144 = vpush %v627_v28 }
 0x1e6   : > { %v1119_v29 = vpop.f32.mrb[0].mxu1 }
 0x1e7   : > { %772 = vst [vmem:[%s274_s14 + $0x8] sm:$0xff] %v1119_v29  ;;  %v762_v30 = vpop.f32.mrb[1].mxu1 }
 0x1e8   : > { %771 = vst [vmem:[%s274_s14] sm:$0xff] %v762_v30 }
 0x1e9   : > { %1325 = shalt.err (!%p1322_p10)
}
 0x1ea   : > { %s1326_s14 = scalar_lea.hbm %s1659_s18, 256  ;;  %s1330_s20 = scalar_lea.hbm %s1745_s4, 512 }
 0x1eb   : > { %p1327_p11 = scmp.ne.s32.totalorder %s1659_s18, %s1326_s14  ;;  %p1331_p0 = scmp.lt.u32.totalorder %s1659_s18, %s1745_s4 }
 0x1ec   : > { %p1332_p1 = scmp.lt.u32.totalorder %s1330_s20, %s1326_s14  ;;  %p1334_p3 = scmp.lt.u32.totalorder %s1326_s14, %s1659_s18 }
 0x1ed   : > { %p1328_p12 = pnand %p1327_p11, %p1511_p4 }
 0x1ee   : > { %p1333_p2 = por %p1332_p1, %p1331_p0 }
 0x1ef   : > { %p1329_p13 = pneg %p1328_p12 }
 0x1f0   : > { %p1335_p5 = por %p1334_p3, %p1333_p2 }
 0x1f2   : > { %p1336_p6 = pnand %p1335_p5, %p1329_p13 }
 0x1f4   : > { %1339 = shalt.err (!%p1336_p6)
}
 0x1f5   : > { %s1431_s27 = smov 128   ;;  %s1432_s13 = smov 8  }
 0x1f6   : > { %1146 = dma.vmem_to_hbm [thread:$0]  (%p1511_p4), %s1654_s15, 256, %s1659_s18, %s774_s19, %s1431_s27, %s1431_s27, %s1432_s13  }
 0x1f7   : > { %s978_s17 = sshll.u32 %s1594_s11, 3  ;;  %s1030_s8 = sshll.u32 %s1414_s24, 7 }
 0x1f8   : > { %s288_s16 = scalar_lea.vmem [#allocation6], %s978_s17  ;;  %s1692_s0 = scalar_lea.hbm %s1747_s6, %s1030_s8 }
 0x1f9   : > { %s832_s20 = sshll.u32 %s288_s16, 4  ;;  %s1433_s11 = smov [#allocation6]   ;;  %s1687_s20 = int_to_ptr.vmem [resolvable:$true] %s832_s20 }
 0x1fa   : > { %s1340_s1 = scalar_lea.vmem %s1687_s20, 128  ;;  %s1344_s24 = sshll.u32 %s1433_s11, 4  ;;  %s1345_s24 = int_to_ptr.vmem [resolvable:$false] %s1344_s24 }
 0x1fb   : > { %p1341_p7 = scmp.ne.s32.totalorder %s1687_s20, %s1340_s1  ;;  %s1346_s15 = scalar_lea.vmem %s1345_s24, 256 }
 0x1fc   : > { %p1347_p11 = scmp.lt.s32.totalorder %s1687_s20, %s1345_s24  ;;  %p1348_p12 = scmp.lt.s32.totalorder %s1346_s15, %s1340_s1 }
 0x1fd   : > { %p1342_p9 = pnand %p1341_p7, %p1511_p4 }
 0x1fe   : > { %p1349_p13 = por %p1348_p12, %p1347_p11 }
 0x1ff   : > { %p1343_p10 = pneg %p1342_p9 }
 0x201   : > { %p1350_p0 = pnand %p1349_p13, %p1343_p10 }
 0x216   : > { %s1145_s14 = spop %1144 }
 0x217   : > { %v629_v31 = vstv %s1145_s14 }
 0x218   : > { %630 = vst [vmem:[%s288_s16] sm:$0xff] %v629_v31 }
 0x219   : > { %1353 = shalt.err (!%p1350_p0)
}
 0x21a   : > { %s1354_s30 = scalar_lea.hbm %s1692_s0, 128  ;;  %s1358_s27 = scalar_lea.hbm %s1747_s6, 256 }
 0x21b   : > { %p1355_p1 = scmp.ne.s32.totalorder %s1692_s0, %s1354_s30  ;;  %p1359_p5 = scmp.lt.u32.totalorder %s1692_s0, %s1747_s6 }
 0x21c   : > { %p1360_p6 = scmp.lt.u32.totalorder %s1358_s27, %s1354_s30  ;;  %p1362_p9 = scmp.lt.u32.totalorder %s1354_s30, %s1692_s0 }
 0x21d   : > { %p1356_p2 = pnand %p1355_p1, %p1511_p4 }
 0x21e   : > { %p1361_p7 = por %p1360_p6, %p1359_p5 }
 0x21f   : > { %p1357_p3 = pneg %p1356_p2 }
 0x220   : > { %p1363_p10 = por %p1362_p9, %p1361_p7 }
 0x222   : > { %p1364_p11 = pnand %p1363_p10, %p1357_p3 }
 0x224   : > { %1367 = shalt.err (!%p1364_p11)
}
 0x225   : > { %s1756_s1 = scalar_lea.sflag [#allocation5], %s1618_s28 }
 0x226   : > { %1148 = dma.vmem_to_hbm [thread:$0]  (%p1511_p4), %s1687_s20, 128, %s1692_s0, %s1756_s1  }
 0x227 PF: > { %p1162_p12 = scmp.ge.s32.totalorder %s1422_s26, 2  ;;  %s844_s16 = sand.u32 1, %s1402_s21  }
 0x228   : > { %s845_s8 = scalar_lea.sflag [#allocation3], %s844_s16 }
 0x229   : > { %p1153_p13 = pnand %p1162_p12, %p1520_p8 }
 0x22b   : > { %1393 = dma.done.wait (!%p1153_p13), %s845_s8, 256  }
 0x22c   : > { %1395 = vsyncadd (!%p1153_p13), %s845_s8, 4294967040  ;;  %s1757_s14 = sadd.s32 4294967294, %s1422_s26  }
 0x22d   : > { %s853_s12 = sand.u32 1, %s1757_s14  }
 0x22e   : > { %s854_s7 = scalar_lea.sflag [#allocation5], %s853_s12 }
 0x22f   : > { %1397 = dma.done.wait (!%p1153_p13), %s854_s7, 640  }
 0x230   : > { %1399 = vsyncadd (!%p1153_p13), %s854_s7, 4294966656  ;;  %s23_s26 = sadd.s32 1, %s1422_s26   ;;  %s1758_s21 = smov %s1406_s22 }
 0x231   : > { %p20_p4 = scmp.ge.s32.totalorder %s23_s26, 4   ;;  %s1759_s22 = smov %s1410_s23 }
 0x232   : > { %s1760_s23 = smov %s1526_s10  ;;  %s1761_s24 = smov %s1418_s25 }
 0x233   : > { %s1762_s25 = smov %s1764_s29  ;;  %22 = sbr.rel (!%p20_p4) target bundleno = 9 (0x9), region = 103 }
 0x23a   :  { %868 = vsyncpa [#allocation3], 1 }
 0x23b   :  { %870 = vsyncpa [#allocation3 + $0x1], 1 }
 0x23c   :  { %871 = vsyncpa [#allocation5], 1 }
 0x23d   :  { %873 = vsyncpa [#allocation5 + $0x1], 1 }

</bundles_post_ra>
